<compile_context>
chip_gen: v6e
topology: v6e:2x2x1
jax: 0.10.0
libtpu: 0.0.40
codegen_flags: <defaults>
</compile_context>

<pallas_src>
import jax
import jax.numpy as jnp
from jax.experimental import pallas as pl
from jax.experimental.pallas import tpu as pltpu


_LANE = 128


def _pick_tile(requested, total, quantum=_LANE):
    """Largest quantum-aligned tile <= requested that divides `total`.

    Big streaming axes (NHW / HW / F) are pre-padded to a multiple of 128 by the
    wrapper, so the full-axis fallback only triggers for small dims (e.g. D)."""
    if total % quantum != 0:
        return total
    t = max(quantum, (min(requested, total) // quantum) * quantum)
    while total % t != 0:
        t -= quantum
    return t


def _pad_axis(a, axis, multiple=_LANE):
    """Zero-pad `axis` of `a` up to a multiple of `multiple`."""
    pad = (-a.shape[axis]) % multiple
    if pad == 0:
        return a
    widths = [(0, 0)] * a.ndim
    widths[axis] = (0, pad)
    return jnp.pad(a, widths)


def _weight_spec(shape, index_map, buffers):
    """BlockSpec for a streamed-weight input; buffers>2 requests deeper pipelining."""
    if buffers is not None and buffers > 2:
        return pl.BlockSpec(shape, index_map, pipeline_mode=pl.Buffered(buffers))
    return pl.BlockSpec(shape, index_map)


def _compiler_params(dimension_semantics, block_bytes, scratch_bytes=0):
    """Explicit VMEM budget: double-buffered blocks + scratch + headroom, clamped to
    [32 MiB, 64 MiB] so it is valid on v5e/v6e (128 MiB physical, 16/32 MiB default
    scoped) and v7x (64 MiB physical, 32 MiB default scoped)."""
    need = 2 * int(sum(block_bytes)) + int(scratch_bytes) + (8 << 20)
    limit = int(min(max(need, 32 << 20), 64 << 20))
    return pltpu.CompilerParams(dimension_semantics=dimension_semantics,
                                vmem_limit_bytes=limit)


# ----------------------------------------------------------------------------
# Kernel 1: segmentation head (1x1 conv as channel mixing) fused with softmax.
# Transposed layout: x as [C, NHW], output seg as [L, NHW] (lane-dense stores).
# ----------------------------------------------------------------------------
def _seg_softmax_kernel(wt_ref, b_ref, x_ref, o_ref):
    # wt_ref: [L, C]   b_ref: [L, 1]   x_ref: [C, T]   o_ref: [L, T]
    # L (~3) and C (~4) are tiny, so an MXU dot would be >95% padding; do the
    # channel contraction as a VPU broadcast-FMA over the static C axis instead.
    w = wt_ref[...]
    s = None
    for ch in range(x_ref.shape[0]):
        term = w[:, ch:ch + 1] * x_ref[ch:ch + 1, :]      # [L,1]*[1,T] -> [L,T]
        s = term if s is None else s + term
    s = s + b_ref[...]
    m = jnp.max(s, axis=0, keepdims=True)
    e = jnp.exp(s - m)
    denom = jnp.sum(e, axis=0, keepdims=True)
    o_ref[...] = e * pl.reciprocal(denom, approx=False)   # exact: strict f32 tol


def seg_softmax(x_cnhw, w_seg, b_seg, *, tile_nhw=8192):
    """x_cnhw: [C, NHWp] (lane-padded) -> seg_t: [L, NHWp], softmax over L."""
    c, nhw = x_cnhw.shape
    l = w_seg.shape[1]
    t = _pick_tile(tile_nhw, nhw)
    wt = jnp.transpose(w_seg)                     # [L, C]
    bt = b_seg.reshape(l, 1)                      # [L, 1]
    block_bytes = (l * c * 4, l * 4, c * t * 4, l * t * 4)
    return pl.pallas_call(
        _seg_softmax_kernel,
        out_shape=jax.ShapeDtypeStruct((l, nhw), jnp.float32),
        grid=(nhw // t,),
        in_specs=[
            pl.BlockSpec((l, c), lambda i: (0, 0)),
            pl.BlockSpec((l, 1), lambda i: (0, 0)),
            pl.BlockSpec((c, t), lambda i: (0, i)),
        ],
        out_specs=pl.BlockSpec((l, t), lambda i: (0, i)),
        compiler_params=_compiler_params(("parallel",), block_bytes),
    )(wt, bt, x_cnhw)


# ----------------------------------------------------------------------------
# Kernel 2a: per-label masked encode.
# Grid = (L, D/Td, HW/Th): per step, mask-mul all C channels of an hw-chunk of x
# by the label mask chunk (C looped/unrolled inside the kernel -> no C grid axis,
# no materialized C-broadcast) and accumulate the encode matmul over the
# F = C*HW reduction in an f32 VMEM scratch.
# ----------------------------------------------------------------------------
def _mask_encode_kernel(x_ref, seg_ref, we_ref, be_ref, code_ref, acc_ref):
    # x_ref   : [C, N, Th]       seg_ref : [1, N, Th]   (label i mask chunk)
    # we_ref  : [1, C, Th, Td]   be_ref  : [1, 1, Td]
    # code_ref: [1, N, Td]       acc_ref : [N, Td] f32
    h_id = pl.program_id(2)

    @pl.when(h_id == 0)
    def _():
        acc_ref[...] = jnp.zeros_like(acc_ref)

    seg = seg_ref[0]                                      # [N, Th]
    partial = jnp.zeros(acc_ref.shape, jnp.float32)
    for ch in range(x_ref.shape[0]):                      # C is small & static
        z = x_ref[ch] * seg                               # f32 mask-mul (VPU)
        partial = partial + jnp.dot(z.astype(we_ref.dtype), we_ref[0, ch],
                                    preferred_element_type=jnp.float32)
    acc_ref[...] += partial

    @pl.when(h_id == pl.num_programs(2) - 1)
    def _():
        code_ref[0] = (acc_ref[...] + be_ref[0]).astype(code_ref.dtype)


def mask_encode(x_cnh, seg_lnh, w_enc_lchd, b_enc, *, tile_hw=4096, tile_d=128,
                weight_buffers=2):
    c, n, hw = x_cnh.shape                    # hw pre-padded to a multiple of 128
    l, _, _, d = w_enc_lchd.shape
    th = _pick_tile(tile_hw, hw)
    td = _pick_tile(tile_d, d)
    wbytes = jnp.dtype(w_enc_lchd.dtype).itemsize
    block_bytes = (c * n * th * 4, n * th * 4, c * th * td * wbytes,
                   td * 4, n * td * 4)
    # TODO(synk): if N grows so x/seg traffic rivals the weights, put the hw-chunk
    # axis outermost with L per-label accumulators so x is DMA'd once instead of Lx.
    return pl.pallas_call(
        _mask_encode_kernel,
        out_shape=jax.ShapeDtypeStruct((l, n, d), jnp.float32),
        grid=(l, d // td, hw // th),
        in_specs=[
            pl.BlockSpec((c, n, th), lambda i, j, k: (0, 0, k)),      # x, all C
            pl.BlockSpec((1, n, th), lambda i, j, k: (i, 0, k)),      # seg label i
            _weight_spec((1, c, th, td), lambda i, j, k: (i, 0, k, j),
                         weight_buffers),                             # W_enc slab
            pl.BlockSpec((1, 1, td), lambda i, j, k: (i, 0, j)),
        ],
        out_specs=pl.BlockSpec((1, n, td), lambda i, j, k: (i, 0, j)),
        scratch_shapes=[pltpu.VMEM((n, td), jnp.float32)],
        compiler_params=_compiler_params(
            ("parallel", "parallel", "arbitrary"), block_bytes,
            scratch_bytes=n * td * 4),
    )(x_cnh, seg_lnh, w_enc_lchd, b_enc)


# ----------------------------------------------------------------------------
# Kernel 2b: per-label decode, tiled over the output F axis so W_dec streams
# in large contiguous chunks and recon stores are lane-dense slabs; the code
# block stays resident across the F axis.
# ----------------------------------------------------------------------------
def _decode_kernel(code_ref, wd_ref, bd_ref, recon_ref):
    # code_ref: [1, N, D]  wd_ref: [1, D, Tf]  bd_ref: [1, 1, Tf]  recon_ref: [1, N, Tf]
    code = code_ref[0].astype(wd_ref.dtype)
    recon_ref[0] = (jnp.dot(code, wd_ref[0], preferred_element_type=jnp.float32)
                    + bd_ref[0]).astype(recon_ref.dtype)


def decode(codes_lnd, w_dec, b_dec, *, tile_f=8192, weight_buffers=2):
    l, n, d = codes_lnd.shape
    f = w_dec.shape[-1]                       # pre-padded to a multiple of 128
    tf = _pick_tile(tile_f, f)
    wbytes = jnp.dtype(w_dec.dtype).itemsize
    block_bytes = (n * d * 4, d * tf * wbytes, tf * 4, n * tf * 4)
    return pl.pallas_call(
        _decode_kernel,
        out_shape=jax.ShapeDtypeStruct((l, n, f), jnp.float32),
        grid=(l, f // tf),
        in_specs=[
            pl.BlockSpec((1, n, d), lambda i, j: (i, 0, 0)),          # resident
            _weight_spec((1, d, tf), lambda i, j: (i, 0, j), weight_buffers),
            pl.BlockSpec((1, 1, tf), lambda i, j: (i, 0, j)),
        ],
        out_specs=pl.BlockSpec((1, n, tf), lambda i, j: (i, 0, j)),
        compiler_params=_compiler_params(("parallel", "parallel"), block_bytes),
    )(codes_lnd, w_dec, b_dec)


# ----------------------------------------------------------------------------
# Wrapper reproducing _SegmRecon.forward semantics
# ----------------------------------------------------------------------------
def segm_recon_forward(x, params, *, matmul_dtype=jnp.bfloat16,
                       tile_nhw=8192, tile_hw=4096, tile_f=8192, tile_d=128,
                       weight_buffers=2):
    """Returns (seg, recons, codes) like _SegmRecon.forward(x).

    matmul_dtype sets the streamed-weight / MXU-operand dtype (bf16 default:
    encode & decode are pure HBM weight streaming with a tiny batch, so halving
    weight bytes roughly halves their runtime).  Mask-mul, softmax, bias adds
    and the reduction accumulator stay f32."""
    n, c, h, w = x.shape
    hw = h * w
    nhw = n * hw
    l = params["w_seg"].shape[1]
    d = params["w_enc"].shape[-1]
    f = params["w_dec"].shape[-1]

    # Channel-leading, lane-dense layout shared by all kernels.
    x_cnhw = jnp.transpose(x, (1, 0, 2, 3)).reshape(c, nhw)           # [C, NHW]

    # --- seg = softmax(segm(x), dim=1), emitted lane-dense as [L, NHWp] -----
    seg_t_p = seg_softmax(_pad_axis(x_cnhw, -1), params["w_seg"], params["b_seg"],
                          tile_nhw=tile_nhw)                          # [L, NHWp]
    seg_t = seg_t_p[:, :nhw]
    seg = jnp.transpose(seg_t.reshape(l, n, h, w), (1, 0, 2, 3))      # [N, L, H, W]

    # --- per-label masked encode (C folded into the kernel; HW lane-padded) -
    # Zero padding is exact: padded x and seg entries are 0, so they add nothing
    # to the F-reduction regardless of the (also zero) padded weight rows.
    x3 = _pad_axis(x_cnhw.reshape(c, n, hw), -1)                      # [C, N, HWp]
    seg3 = _pad_axis(seg_t.reshape(l, n, hw), -1)                     # [L, N, HWp]
    w_enc = _pad_axis(params["w_enc"].reshape(l, c, hw, d), 2).astype(matmul_dtype)
    codes_lnd = mask_encode(x3, seg3, w_enc, params["b_enc"],
                            tile_hw=tile_hw, tile_d=tile_d,
                            weight_buffers=weight_buffers)            # [L, N, D]

    # --- per-label decode, tiled over the (lane-padded) output F axis -------
    w_dec = _pad_axis(params["w_dec"], -1).astype(matmul_dtype)
    b_dec = _pad_axis(params["b_dec"], -1)
    recons_lnf = decode(codes_lnd, w_dec, b_dec, tile_f=tile_f,
                        weight_buffers=weight_buffers)[:, :, :f]

    codes = jnp.transpose(codes_lnd, (1, 0, 2))                       # [N, L, D]
    recons = [recons_lnf[i].reshape(n, c, h, w) for i in range(l)]
    return seg, recons, codes


# ----------------------------------------------------------------------------
# Pure-JAX reference for correctness checking
# ----------------------------------------------------------------------------
def ref_forward(x, params):
    n, c, h, w = x.shape
    l = params["w_seg"].shape[1]
    s = jnp.einsum("nchw,cl->nlhw", x, params["w_seg"]) \
        + params["b_seg"][0][None, :, None, None]
    seg = jax.nn.softmax(s, axis=1)
    codes, recons = [], []
    for i in range(l):
        z = (x * seg[:, i:i + 1]).reshape(n, -1)
        code = z @ params["w_enc"][i] + params["b_enc"][i, 0]
        rec = (code @ params["w_dec"][i] + params["b_dec"][i, 0]).reshape(n, c, h, w)
        codes.append(code)
        recons.append(rec)
    return seg, recons, jnp.stack(codes, axis=1)


if __name__ == "__main__":
    def _make_inputs(key, N, C, H, W, L, D):
        F = C * H * W
        kx, k1, k2, k3, k4, k5, k6 = jax.random.split(key, 7)
        x = jax.random.normal(kx, (N, C, H, W), dtype=jnp.float32)
        params = {
            "w_seg": 0.2 * jax.random.normal(k1, (C, L), dtype=jnp.float32),
            "b_seg": 0.1 * jax.random.normal(k5, (1, L), dtype=jnp.float32),
            "w_enc": 0.05 * jax.random.normal(k2, (L, F, D), dtype=jnp.float32),
            "b_enc": 0.01 * jax.random.normal(k3, (L, 1, D), dtype=jnp.float32),
            "w_dec": 0.05 * jax.random.normal(k4, (L, D, F), dtype=jnp.float32),
            "b_dec": 0.01 * jax.random.normal(k6, (L, 1, F), dtype=jnp.float32),
        }
        return x, params

    def _check(out, ref, atol, rtol):
        seg, recons, codes = out
        seg_r, recons_r, codes_r = ref
        assert jnp.allclose(seg, seg_r, atol=1e-5, rtol=1e-5)      # seg stays f32
        assert jnp.allclose(codes, codes_r, atol=atol, rtol=rtol)
        for r, rr in zip(recons, recons_r):
            assert jnp.allclose(r, rr, atol=atol, rtol=rtol)

    # --- case 1: lane-aligned shapes ----------------------------------------
    N, C, H, W, L, D = 2, 4, 16, 16, 3, 32
    x, params = _make_inputs(jax.random.PRNGKey(0), N, C, H, W, L, D)
    ref = ref_forward(x, params)

    # f32 weight path with small tiles: exercises multi-block pipelining, the
    # F-reduction accumulator and the decode output tiling; strict tolerances.
    out = segm_recon_forward(x, params, matmul_dtype=jnp.float32,
                             tile_nhw=128, tile_hw=128, tile_f=256)
    jax.block_until_ready(out)
    seg, recons, codes = out
    assert seg.shape == (N, L, H, W) and codes.shape == (N, L, D)
    assert len(recons) == L and recons[0].shape == (N, C, H, W)
    _check(out, ref, atol=1e-4, rtol=1e-4)

    # Default path: bf16 weight streaming, large default tiles (clip to axis).
    out_b = segm_recon_forward(x, params)
    jax.block_until_ready(out_b)
    _check(out_b, ref, atol=5e-2, rtol=5e-2)

    # --- case 2: non-128-multiple H*W and F exercise the wrapper padding ----
    x2, params2 = _make_inputs(jax.random.PRNGKey(1), 2, 4, 12, 12, L, D)
    ref2 = ref_forward(x2, params2)
    out2 = segm_recon_forward(x2, params2, matmul_dtype=jnp.float32,
                              tile_nhw=128, tile_hw=128, tile_f=256)
    jax.block_until_ready(out2)
    _check(out2, ref2, atol=1e-4, rtol=1e-4)

    print("KERNEL_OK")
</pallas_src>

<mosaic_0001>
module attributes {stable_mosaic.version = 11 : i64} {
  func.func @_seg_softmax_kernel(%arg0: i32, %arg1: memref<3x4xf32, #tpu.memory_space<vmem>>, %arg2: memref<3x1xf32, #tpu.memory_space<vmem>>, %arg3: memref<4x128xf32, #tpu.memory_space<vmem>>, %arg4: memref<3x128xf32, #tpu.memory_space<vmem>>) attributes {dimension_semantics = [#tpu.dimension_semantics<parallel>], iteration_bounds = array<i64: 4>, scalar_prefetch = 0 : i64, scratch_operands = 0 : i64, tpu.core_type = #tpu.core_type<tc>, window_params = [{pipeline_mode = #tpu.pipeline_mode<synchronous>, transform_indices = @transform_0, window_bounds = array<i64: 3, 4>}, {pipeline_mode = #tpu.pipeline_mode<synchronous>, transform_indices = @transform_1, window_bounds = array<i64: 3, 1>}, {transform_indices = @transform_2, window_bounds = array<i64: 4, 128>}, {transform_indices = @transform_3, window_bounds = array<i64: 3, 128>}]} {
    %c0 = arith.constant 0 : index
    %c0_0 = arith.constant 0 : index
    %0 = vector.load %arg1[%c0, %c0_0] : memref<3x4xf32, #tpu.memory_space<vmem>>, vector<3x4xf32>
    %1 = vector.extract_strided_slice %0 {offsets = [0, 0], sizes = [3, 1], strides = [1, 1]} : vector<3x4xf32> to vector<3x1xf32>
    %c0_1 = arith.constant 0 : index
    %c0_2 = arith.constant 0 : index
    %2 = vector.load %arg3[%c0_1, %c0_2] : memref<4x128xf32, #tpu.memory_space<vmem>>, vector<1x128xf32>
    %3 = vector.broadcast %1 : vector<3x1xf32> to vector<3x128xf32>
    %4 = vector.broadcast %2 : vector<1x128xf32> to vector<3x128xf32>
    %5 = arith.mulf %3, %4 : vector<3x128xf32>
    %6 = vector.extract_strided_slice %0 {offsets = [0, 1], sizes = [3, 1], strides = [1, 1]} : vector<3x4xf32> to vector<3x1xf32>
    %c1 = arith.constant 1 : index
    %c0_3 = arith.constant 0 : index
    %7 = vector.load %arg3[%c1, %c0_3] : memref<4x128xf32, #tpu.memory_space<vmem>>, vector<1x128xf32>
    %8 = vector.broadcast %6 : vector<3x1xf32> to vector<3x128xf32>
    %9 = vector.broadcast %7 : vector<1x128xf32> to vector<3x128xf32>
    %10 = arith.mulf %8, %9 : vector<3x128xf32>
    %11 = arith.addf %5, %10 : vector<3x128xf32>
    %12 = vector.extract_strided_slice %0 {offsets = [0, 2], sizes = [3, 1], strides = [1, 1]} : vector<3x4xf32> to vector<3x1xf32>
    %c2 = arith.constant 2 : index
    %c0_4 = arith.constant 0 : index
    %13 = vector.load %arg3[%c2, %c0_4] : memref<4x128xf32, #tpu.memory_space<vmem>>, vector<1x128xf32>
    %14 = vector.broadcast %12 : vector<3x1xf32> to vector<3x128xf32>
    %15 = vector.broadcast %13 : vector<1x128xf32> to vector<3x128xf32>
    %16 = arith.mulf %14, %15 : vector<3x128xf32>
    %17 = arith.addf %11, %16 : vector<3x128xf32>
    %18 = vector.extract_strided_slice %0 {offsets = [0, 3], sizes = [3, 1], strides = [1, 1]} : vector<3x4xf32> to vector<3x1xf32>
    %c3 = arith.constant 3 : index
    %c0_5 = arith.constant 0 : index
    %19 = vector.load %arg3[%c3, %c0_5] : memref<4x128xf32, #tpu.memory_space<vmem>>, vector<1x128xf32>
    %20 = vector.broadcast %18 : vector<3x1xf32> to vector<3x128xf32>
    %21 = vector.broadcast %19 : vector<1x128xf32> to vector<3x128xf32>
    %22 = arith.mulf %20, %21 : vector<3x128xf32>
    %23 = arith.addf %17, %22 : vector<3x128xf32>
    %c0_6 = arith.constant 0 : index
    %c0_7 = arith.constant 0 : index
    %24 = vector.load %arg2[%c0_6, %c0_7] : memref<3x1xf32, #tpu.memory_space<vmem>>, vector<3x1xf32>
    %25 = vector.broadcast %24 : vector<3x1xf32> to vector<3x128xf32>
    %26 = arith.addf %23, %25 : vector<3x128xf32>
    %cst = arith.constant dense<0xFF800000> : vector<128xf32>
    %27 = vector.multi_reduction <maximumf>, %26, %cst [0] : vector<3x128xf32> to vector<128xf32>
    %28 = vector.shape_cast %27 : vector<128xf32> to vector<1x128xf32>
    %29 = vector.broadcast %28 : vector<1x128xf32> to vector<3x128xf32>
    %30 = arith.subf %26, %29 : vector<3x128xf32>
    %31 = math.exp %30 : vector<3x128xf32>
    %cst_8 = arith.constant dense<0.000000e+00> : vector<128xf32>
    %32 = vector.multi_reduction <add>, %31, %cst_8 [0] : vector<3x128xf32> to vector<128xf32>
    %33 = vector.shape_cast %32 : vector<128xf32> to vector<1x128xf32>
    %34 = tpu.reciprocal %33 : vector<1x128xf32> -> vector<1x128xf32>
    %35 = vector.broadcast %34 : vector<1x128xf32> to vector<3x128xf32>
    %36 = arith.mulf %31, %35 : vector<3x128xf32>
    %c0_9 = arith.constant 0 : index
    %c0_10 = arith.constant 0 : index
    %37 = vector.load %arg4[%c0_9, %c0_10] : memref<3x128xf32, #tpu.memory_space<vmem>>, vector<3x128xf32>
    tpu.vector_store %arg4[%c0_9, %c0_10], %36 {strides = array<i32>} : memref<3x128xf32, #tpu.memory_space<vmem>>, vector<3x128xf32>,
    return
  }
  func.func @transform_0(%arg0: i32) -> (i32, i32) {
    %c0_i32 = arith.constant 0 : i32
    %c0_i32_0 = arith.constant 0 : i32
    %c0_i32_1 = arith.constant 0 : i32
    return %c0_i32, %c0_i32_0 : i32, i32
  }
  func.func @transform_1(%arg0: i32) -> (i32, i32) {
    %c0_i32 = arith.constant 0 : i32
    %c0_i32_0 = arith.constant 0 : i32
    %c0_i32_1 = arith.constant 0 : i32
    return %c0_i32, %c0_i32_0 : i32, i32
  }
  func.func @transform_2(%arg0: i32) -> (i32, i32) {
    %c0_i32 = arith.constant 0 : i32
    %c0_i32_0 = arith.constant 0 : i32
    return %c0_i32, %arg0 : i32, i32
  }
  func.func @transform_3(%arg0: i32) -> (i32, i32) {
    %c0_i32 = arith.constant 0 : i32
    %c0_i32_0 = arith.constant 0 : i32
    return %c0_i32, %arg0 : i32, i32
  }
}

</mosaic_0001>

<bundles_post_ra>
// kernel: tpu_custom_call.1
= control target key start
LH: loop header
LB: loop body
LE: loop exit
PB: predicated region body
PF: predicated region fallthrough
CT: control target
= control target key end

     0   :  { %8 = vsyncpa [#allocation3], 0  ;;  %s688_s0 = inlined_call_operand.vmem [shape: f32[3,4], index: 0, kind: input, shape index: {}]   ;;  %s689_s1 = inlined_call_operand.vmem [shape: f32[3,1], index: 1, kind: input, shape index: {}]   ;;  %s690_s2 = inlined_call_operand.hbm [shape: f32[4,512], index: 2, kind: input, shape index: {}]   ;;  %s691_s3 = inlined_call_operand.hbm [shape: f32[3,512], index: 3, kind: output, shape index: {}]  }
   0x1   :  { %10 = vsyncpa [#allocation3 + $0x1], 0 }
   0x2   :  { %11 = vsyncpa [#allocation4], 0 }
   0x3   :  { %13 = vsyncpa [#allocation4 + $0x1], 0  ;;  %s539_s12 = smov 0   ;;  %s541_s13 = smov 0  }
   0x4   :  { %s543_s14 = smov 0   ;;  %s545_s15 = smov 0  }
   0x5 LB: > { %s560_s16 = sadd.s32 4294967295, %s511_s15   ;;  %s343_s17 = sadd.s32 4294967294, %s511_s15   ;;  %s511_s15 = sphi %s545_s15, %s707_s15   ;;  %s507_s14 = sphi %s543_s14, %s706_s14   ;;  %s503_s13 = sphi %s541_s13, %s705_s13   ;;  %s499_s12 = sphi %s539_s12, %s704_s12  }
   0x6   : > { %s564_s18 = sadd.s32 1, %s511_s15   ;;  %s68_s19 = sadd.s32 1, %s507_s14 }
   0x7   : > { %s65_s20 = ssub.s32 %s511_s15, %s564_s18  ;;  %p75_p0 = scmp.ne.s32.totalorder %s507_s14, %s503_s13 }
   0x8   : > { %p66_p1 = scmp.eq.s32.totalorder %s65_s20, 0  ;;  %p76_p2 = scmp.eq.s32.totalorder %s511_s15, 0 }
   0x9   : > { %p81_p3 = scmp.ne.s32.totalorder %s503_s13, %s499_s12  ;;  %p82_p4 = scmp.eq.s32.totalorder %s560_s16, 0 }
   0xa   : > { %s576_s21 = scalar_select %p66_p1, %s507_s14, %s68_s19  }
   0xb   : > { %p578_p5 = por %p76_p2, %p75_p0  ;;  %p582_p6 = por %p82_p4, %p81_p3 }
   0xc   : > { %p105_p7 = scmp.eq.s32.totalorder %s560_s16, 3  ;;  %p111_p8 = scmp.eq.s32.totalorder %s343_s17, 3 }
   0xd   : > { %s695_s23 = scalar_select %p582_p6, 1, 0 }
   0xe   : > { %p371_p9 = scmp.lt.s32.totalorder %s511_s15, 4  ;;  %p588_p10 = por %p105_p7, %p75_p0 }
   0xf   : > { %p592_p11 = por %p111_p8, %p81_p3  ;;  %s137_s26 = sand.u32 1, %s507_s14  }
  0x10   : > { %s696_s24 = scalar_select %p588_p10, 1, 0 }
  0x11   : > { %s697_s25 = scalar_select %p592_p11, 1, 0 }
  0x12   : > { %s347_s27 = sshll.u32 %s511_s15, 6  ;;  %s346_s28 = sshll.u32 %s137_s26, 2 }
  0x13   : > { %s601_s4 = scalar_lea.hbm %s690_s2, %s347_s27  ;;  %s141_s5 = scalar_lea.vmem [#allocation2], %s346_s28 }
  0x14   : > { %s148_s6 = sshll.u32 %s141_s5, 4  ;;  %p605_p12 = pnand %p371_p9, %p578_p5  ;;  %s609_s6 = int_to_ptr.vmem [resolvable:$true] %s148_s6 }
  0x15   : > { %s138_s8 = scalar_lea.sflag [#allocation3], %s137_s26  ;;  %s419_s9 = scalar_lea.hbm %s601_s4, 64 }
  0x16   : > { %p420_p1 = scmp.ne.s32.totalorder %s601_s4, %s419_s9  ;;  %p421_p2 = pneg %p605_p12 }
  0x17   : > { %s424_s17 = scalar_lea.hbm %s690_s2, 256  ;;  %p425_p5 = scmp.lt.s32.totalorder %s601_s4, %s690_s2 }
  0x18   : > { %p422_p3 = pnand %p421_p2, %p420_p1  ;;  %p426_p7 = scmp.lt.s32.totalorder %s424_s17, %s419_s9 }
  0x1a   : > { %p423_p4 = pneg %p422_p3  ;;  %p427_p8 = por %p426_p7, %p425_p5 }
  0x1c   : > { %p428_p9 = pnand %p427_p8, %p423_p4 }
  0x1e   : > { %431 = shalt.err (!%p428_p9)
}
  0x1f   : > { %s432_s22 = scalar_lea.vmem %s609_s6, 64  ;;  %s513_s26 = smov [#allocation2]  }
  0x20   : > { %p433_p13 = scmp.ne.s32.totalorder %s609_s6, %s432_s22  ;;  %s437_s27 = sshll.u32 %s513_s26, 4  ;;  %s438_s27 = int_to_ptr.vmem [resolvable:$false] %s437_s27 }
  0x21   : > { %s439_s28 = scalar_lea.vmem %s438_s27, 128  ;;  %p440_p3 = scmp.lt.s32.totalorder %s609_s6, %s438_s27 }
  0x22   : > { %p435_p0 = pnand %p433_p13, %p421_p2  ;;  %p441_p11 = scmp.lt.s32.totalorder %s439_s28, %s432_s22 }
  0x24   : > { %p436_p1 = pneg %p435_p0  ;;  %p442_p10 = por %p441_p11, %p440_p3 }
  0x26   : > { %p443_p6 = pnand %p442_p10, %p436_p1 }
  0x28   : > { %446 = shalt.err (!%p443_p6)
}
  0x29   : > { %366 = dma.hbm_to_vmem [thread:$0]  (!%p605_p12), %s601_s4, 64, %s609_s6, %s138_s8  }
  0x2a   : > { %p699_p4 = scmp.lt.s32.totalorder %s511_s15, 5  ;;  %p700_p5 = scmp.ge.s32.totalorder %s511_s15, 1 }
  0x2c   : > { %p154_p13 = pnand %p700_p5, %p699_p4 }
  0x2d   : > { %s636_s29 = sand.u32 (!%p154_p13), 1, %s503_s13   ;;  %p701_p6 = scmp.ne.s32.totalorder (!%p154_p13), %s695_s23, 0 }
  0x2e   : > { %157 = sbr.rel (%p154_p13) target bundleno = 266 (0x10a), region = 32  ;;  %s349_s30 = sshll.u32 (!%p154_p13), %s636_s29, 2 }
  0x2f   : > { %s160_s5 = scalar_lea.sflag (!%p154_p13), [#allocation3], %s636_s29  ;;  %s163_s7 = scalar_lea.vmem (!%p154_p13), [#allocation2], %s349_s30 }
  0x33   : > { %490 = dma.done.wait (%p701_p6), %s160_s5, 64  }
  0x34   : > { %492 = vsyncadd (%p701_p6), %s160_s5, 4294967232  ;;  %v514_v0 = vmov 0   ;;  %v515_v1 = vmov 2   ;;  %v186_v2 = vld [vmem:[%s688_s0] sm:$0x7]  ;;  %v516_v3 = vmov 1  }
  0x35   : > { %409 = vset.pattern.permute.xlu0 %v514_v0  ;;  %411 = vset.pattern.permute.xlu1 %v515_v1  ;;  %v517_v4 = vmov 3   ;;  %v231_v5 = vld [vmem:[%s689_s1] sm:$0x7]  ;;  %v354_v12 = vld [vmem:[%s163_s7 + $0x3] ss:$0 sm:$0xff]  ;;  %vm238_vm0 = vcmask 1042432  }
  0x36   : > { %190 = vperm.xlu0 %409, %v186_v2   ;;  %211 = vperm.xlu1 %411, %v186_v2   ;;  %v351_v8 = vld [vmem:[%s163_s7] ss:$0 sm:$0xff]  ;;  %v352_v9 = vld [vmem:[%s163_s7 + $0x1] ss:$0 sm:$0xff]  ;;  %v353_v10 = vld [vmem:[%s163_s7 + $0x2] ss:$0 sm:$0xff] }
  0x37   : > { %s356_s23 = sshll.u32 %s560_s16, 6  ;;  %s185_s10 = scalar_lea.vmem [#allocation5], %s349_s30 }
  0x38   : > { %s273_s11 = sshll.u32 %s185_s10, 4  ;;  %s271_s20 = scalar_lea.hbm %s691_s3, %s356_s23  ;;  %s274_s11 = int_to_ptr.vmem [resolvable:$true] %s273_s11 }
  0x39   : > { %s260_s22 = scalar_lea.sflag [#allocation4], %s636_s29  ;;  %s447_s26 = scalar_lea.vmem %s274_s11, 64 }
  0x3a   : > { %410 = vset.pattern.permute.xlu0 %v516_v3  ;;  %412 = vset.pattern.permute.xlu1 %v517_v4  ;;  %p448_p10 = scmp.ne.s32.totalorder %s274_s11, %s447_s26  ;;  %p702_p11 = scmp.ne.s32.totalorder %s696_s24, 0 }
  0x3b   : > { %200 = vperm.xlu0 %410, %v186_v2   ;;  %222 = vperm.xlu1 %412, %v186_v2   ;;  %s518_s27 = smov [#allocation5]  }
  0x3c   : > { %p449_p12 = pnand %p448_p10, %p702_p11  ;;  %s451_s28 = sshll.u32 %s518_s27, 4  ;;  %s452_s28 = int_to_ptr.vmem [resolvable:$false] %s451_s28 }
  0x3d   : > { %s453_s16 = scalar_lea.vmem %s452_s28, 128  ;;  %p454_p2 = scmp.lt.s32.totalorder %s274_s11, %s452_s28 }
  0x3e   : > { %p450_p0 = pneg %p449_p12  ;;  %p455_p7 = scmp.lt.s32.totalorder %s453_s16, %s447_s26 }
  0x3f   : > { %413 = vset.pattern.permute.xlu1 %v514_v0  ;;  %414 = vset.pattern.permute.xlu0 %v514_v0 }
  0x40   : > { %234 = vperm.xlu1 %413, %v231_v5   ;;  %p456_p8 = por %p455_p7, %p454_p2 }
  0x42   : > { %p457_p9 = pnand %p456_p8, %p450_p0 }
  0xb1   : > { %v191_v6 = vpop.permute.xlu0 %190  ;;  %v212_v7 = vpop.permute.xlu1 %211 }
  0xb2   : > { %v197_v14 = vmul.f32 %v351_v8, %v191_v6  ;;  %v218_v16 = vmul.f32 %v353_v10, %v212_v7 }
  0xb6   : > { %v201_v11 = vpop.permute.xlu0 %200  ;;  %v223_v13 = vpop.permute.xlu1 %222 }
  0xb7   : > { %v207_v15 = vmul.f32 %v352_v9, %v201_v11  ;;  %v229_v18 = vmul.f32 %v354_v12, %v223_v13 }
  0xb9   : > { %v208_v17 = vadd.f32 %v207_v15, %v197_v14 }
  0xbb   : > { %v219_v19 = vadd.f32 %v218_v16, %v208_v17  ;;  %v235_v20 = vpop.permute.xlu1 %234 }
  0xbd   : > { %v230_v21 = vadd.f32 %v229_v18, %v219_v19 }
  0xbf   : > { %v237_v22 = vadd.f32 %v235_v20, %v230_v21 }
  0xc1   : > { %v239_v23 = vsel %vm238_vm0, %v237_v22, -inf }
  0xc2   : > { %v240_v24 = vrot.slane %v239_v23, 4 }
  0xc4   : > { %v241_v25 = vmax.f32 %v239_v23, %v240_v24 }
  0xc6   : > { %v242_v26 = vrot.slane %v241_v25, 2 }
  0xc8   : > { %v243_v27 = vmax.f32 %v241_v25, %v242_v26 }
  0xca   : > { %v244_v28 = vrot.slane %v243_v27, 1 }
  0xcc   : > { %v245_v29 = vmax.f32 %v243_v27, %v244_v28 }
  0xce   : > { %v246_v30 = vsub.f32 %v237_v22, %v245_v29 }
  0xd0   : > { %v247_v31 = vmul.f32 1.442695, %v246_v30 }
  0xd2   : > { %415 = vpow2.f32 %v247_v31 }
  0xdf   : > { %v416_v32 = vpop.eup %415 }
  0xe0   : > { %v249_v33 = vsel %vm238_vm0, %v416_v32, 0.0 }
  0xe1   : > { %v250_v34 = vrot.slane %v249_v33, 4 }
  0xe3   : > { %v251_v35 = vadd.f32 %v250_v34, %v249_v33 }
  0xe5   : > { %v252_v36 = vrot.slane %v251_v35, 2 }
  0xe7   : > { %v253_v37 = vadd.f32 %v252_v36, %v251_v35 }
  0xe9   : > { %v254_v38 = vrot.slane %v253_v37, 1 }
  0xeb   : > { %v255_v39 = vadd.f32 %v254_v38, %v253_v37 }
  0xed   : > { %417 = vrcp.f32 %v255_v39 }
  0xfa   : > { %v418_v40 = vpop.eup %417 }
  0xfb   : > { %v257_v41 = vmul.f32 %v418_v40, %v416_v32 }
  0xfd   : > { %258 = vst [vmem:[%s185_s10] sm:$0x7] %v257_v41 }
  0xfe   : > { %460 = shalt.err (!%p457_p9)
}
  0xff   : > { %s461_s30 = scalar_lea.hbm %s271_s20, 64  ;;  %s465_s7 = scalar_lea.hbm %s691_s3, 256 }
 0x100   : > { %p462_p1 = scmp.ne.s32.totalorder %s271_s20, %s461_s30  ;;  %p466_p5 = scmp.lt.s32.totalorder %s271_s20, %s691_s3 }
 0x101   : > { %p467_p13 = scmp.lt.s32.totalorder %s465_s7, %s461_s30 }
 0x102   : > { %p463_p3 = pnand %p462_p1, %p702_p11 }
 0x103   : > { %p468_p6 = por %p467_p13, %p466_p5 }
 0x104   : > { %p464_p4 = pneg %p463_p3 }
 0x106   : > { %p469_p10 = pnand %p468_p6, %p464_p4 }
 0x108   : > { %472 = shalt.err (!%p469_p10)
}
 0x109   : > { %361 = dma.vmem_to_hbm [thread:$0]  (%p702_p11), %s274_s11, 64, %s271_s20, %s260_s22  }
 0x10a PF: > { %p372_p12 = scmp.ge.s32.totalorder %s511_s15, 2  ;;  %s285_s8 = sand.u32 1, %s499_s12  }
 0x10b   : > { %p703_p0 = scmp.ne.s32.totalorder %s697_s25, 0  ;;  %s286_s9 = scalar_lea.sflag [#allocation4], %s285_s8 }
 0x10d   : > { %p368_p2 = pnand %p372_p12, %p703_p0 }
 0x10f   : > { %p369_p7 = pneg %p368_p2 }
 0x111   : > { %494 = dma.done.wait (%p369_p7), %s286_s9, 64  }
 0x112   : > { %496 = vsyncadd (%p369_p7), %s286_s9, 4294967232  ;;  %p16_p8 = scmp.ge.s32.totalorder %s564_s18, 6   ;;  %s704_s12 = smov %s503_s13 }
 0x113   : > { %s705_s13 = smov %s507_s14  ;;  %s706_s14 = smov %s576_s21 }
 0x114   : > { %s707_s15 = smov %s564_s18  ;;  %18 = sbr.rel (!%p16_p8) target bundleno = 5 (0x5), region = 77 }
 0x119   :  { %291 = vsyncpa [#allocation3], 1 }
 0x11a   :  { %293 = vsyncpa [#allocation3 + $0x1], 1 }
 0x11b   :  { %294 = vsyncpa [#allocation4], 1 }
 0x11c   :  { %296 = vsyncpa [#allocation4 + $0x1], 1 }

</bundles_post_ra>
